<compile_context>
chip_gen: v7x
topology: tpu7x:2x2x1
jax: 0.10.0
libtpu: 0.0.40
codegen_flags: <defaults>
</compile_context>

<pallas_src>
import functools

import jax
import jax.numpy as jnp
from jax.experimental import pallas as pl
from jax.experimental.pallas import tpu as pltpu


# ------------------------------------------------------------------ config ---
# Synthetic stand-in for the YAML config the PyTorch module reads from disk.
CONFIG = {
    "encoder": {"input_size": 32, "hidden_sizes": [64, 64], "dropout": 0.1},
    "attention": {"num_heads": 4, "dropout": 0.1},
    "decoder": {"hidden_sizes": [64, 32], "dropout": 0.1},
    "recovery_strategies": ["phrase", "brute", "dict", "hybrid", "gpu", "manual"],
}

LN_EPS = 1e-5


# ------------------------------------------------------------------ kernel ---
def _linear_ln_relu(x, w_ref, p_ref):
    """Linear -> LayerNorm (eps=1e-5, biased var) -> ReLU, matching PyTorch.

    p_ref is a packed (3, H) array: row 0 = bias, row 1 = gamma, row 2 = beta.
    """
    p = p_ref[...]
    y = jnp.dot(x, w_ref[...], preferred_element_type=jnp.float32) + p[0:1]
    mu = jnp.mean(y, axis=-1, keepdims=True)
    d = y - mu
    var = jnp.mean(d * d, axis=-1, keepdims=True)
    y = d * jax.lax.rsqrt(var + LN_EPS) * p[1:2] + p[2:3]
    return jnp.maximum(y, 0.0)


def wallet_recovery_kernel(
    x_ref,
    # encoder layers (weight, packed bias/gamma/beta)
    e0_w, e0_p,
    e1_w, e1_p,
    # attention: V and output projections folded into one matmul at init
    attn_w, attn_b,
    # decoder layers
    d0_w, d0_p,
    d1_w, d1_p,
    # fused heads: [strategy | confidence] columns
    head_w, head_b,
    # outputs
    strategy_ref, conf_ref,
    *,
    n_strategies,
):
    x = x_ref[...]

    # ---- encoder ----
    x = _linear_ln_relu(x, e0_w, e0_p)
    x = _linear_ln_relu(x, e1_w, e1_p)

    # ---- multi-head self-attention over a length-1 sequence ----
    # softmax over the single key is exactly 1 (per head), so
    # attn_out == out_proj(v_proj(x)); W_attn = Wv @ Wo and
    # b_attn = bv @ Wo + bo were folded at init (f32, exact).
    x = jnp.dot(x, attn_w[...], preferred_element_type=jnp.float32) + attn_b[...]

    # ---- decoder ----
    x = _linear_ln_relu(x, d0_w, d0_p)
    x = _linear_ln_relu(x, d1_w, d1_p)

    # ---- fused heads: one matmul, then split columns ----
    logits = jnp.dot(x, head_w[...], preferred_element_type=jnp.float32) + head_b[...]
    s = logits[:, :n_strategies]
    c = logits[:, n_strategies:n_strategies + 1]

    # strategy head: softmax(s, dim=-1); EUP approx reciprocal for the denom.
    m = jnp.max(s, axis=-1, keepdims=True)
    e = jnp.exp(s - m)
    strategy_ref[...] = e * pl.reciprocal(jnp.sum(e, axis=-1, keepdims=True),
                                          approx=True)

    # confidence head: sigmoid via tanh (EUP path, no inf intermediates).
    conf_ref[...] = 0.5 * jnp.tanh(0.5 * c) + 0.5


# ----------------------------------------------------------------- wrapper ---
@functools.partial(jax.jit, static_argnames=("n_strategies", "tile_b"))
def wallet_recovery_forward(features, flat_params, n_strategies, tile_b=512):
    batch, in_size = features.shape

    # Batch tile: full batch when small, otherwise a sublane-aligned tile.
    tb = batch if batch <= tile_b else tile_b
    grid = (pl.cdiv(batch, tb),)

    # Features / outputs are blocked along batch; all weights stay resident.
    x_spec = pl.BlockSpec((tb, in_size), lambda i: (i, 0))
    param_specs = [pl.BlockSpec(p.shape, lambda i: (0, 0)) for p in flat_params]
    out_specs = (
        pl.BlockSpec((tb, n_strategies), lambda i: (i, 0)),
        pl.BlockSpec((tb, 1), lambda i: (i, 0)),
    )
    out_shape = (
        jax.ShapeDtypeStruct((batch, n_strategies), jnp.float32),
        jax.ShapeDtypeStruct((batch, 1), jnp.float32),
    )

    strategy, confidence = pl.pallas_call(
        functools.partial(wallet_recovery_kernel, n_strategies=n_strategies),
        out_shape=out_shape,
        grid=grid,
        in_specs=[x_spec] + param_specs,
        out_specs=out_specs,
        compiler_params=pltpu.CompilerParams(
            dimension_semantics=("parallel",)),
    )(features, *flat_params)
    return {"strategy": strategy, "confidence": confidence}


# --------------------------------------------------------------- init glue ---
def _linear_params(key, in_f, out_f):
    """Deterministic Linear init; weight returned pre-transposed as (in, out)."""
    kw, kb = jax.random.split(key)
    bound = 1.0 / jnp.sqrt(in_f)
    w = jax.random.uniform(kw, (in_f, out_f), jnp.float32, -bound, bound)
    b = jax.random.uniform(kb, (1, out_f), jnp.float32, -bound, bound)
    return w, b


def _block_params(key, in_f, out_f):
    """Linear + LayerNorm block: weight (in,out) and packed (3,out) params."""
    w, b = _linear_params(key, in_f, out_f)
    gamma = jnp.ones((1, out_f), jnp.float32)
    beta = jnp.zeros((1, out_f), jnp.float32)
    packed = jnp.concatenate([b, gamma, beta], axis=0)   # (3, out)
    return [w, packed]


def init_flat_params(key, cfg):
    flat = []
    prev = cfg["encoder"]["input_size"]
    keys = iter(jax.random.split(key, 32))

    for h in cfg["encoder"]["hidden_sizes"]:
        flat += _block_params(next(keys), prev, h)
        prev = h

    embed = prev
    # MHA with seq_len==1: only V and output projections matter (Q/K drop out).
    # Fold them in f32: x @ Wv @ Wo + (bv @ Wo + bo) == x @ W_attn + b_attn.
    wv, bv = _linear_params(next(keys), embed, embed)
    wo, bo = _linear_params(next(keys), embed, embed)
    attn_w = wv @ wo                      # (embed, embed)
    attn_b = bv @ wo + bo                 # (1, embed)
    flat += [attn_w, attn_b]

    for h in cfg["decoder"]["hidden_sizes"]:
        flat += _block_params(next(keys), prev, h)
        prev = h

    # Fused heads: [strategy (n_strat cols) | confidence (1 col)].
    n_strat = len(cfg["recovery_strategies"])
    sw, sb = _linear_params(next(keys), prev, n_strat)
    cw, cb = _linear_params(next(keys), prev, 1)
    head_w = jnp.concatenate([sw, cw], axis=1)    # (prev, n_strat + 1)
    head_b = jnp.concatenate([sb, cb], axis=1)    # (1, n_strat + 1)
    flat += [head_w, head_b]
    return flat


# -------------------------------------------------------------------- main ---
if __name__ == "__main__":
    key = jax.random.PRNGKey(0)
    k_params, k_x = jax.random.split(key)

    batch = 8
    features = jax.random.normal(
        k_x, (batch, CONFIG["encoder"]["input_size"]), jnp.float32
    )
    flat_params = init_flat_params(k_params, CONFIG)

    out = wallet_recovery_forward(
        features, flat_params, len(CONFIG["recovery_strategies"])
    )
    jax.block_until_ready(out)

    n_strat = len(CONFIG["recovery_strategies"])
    assert out["strategy"].shape == (batch, n_strat)
    assert out["confidence"].shape == (batch, 1)
    # strategy rows are a softmax -> sum to ~1 (approx EUP reciprocal in denom)
    assert jnp.allclose(jnp.sum(out["strategy"], axis=-1), 1.0, atol=1e-2)
    # confidence is a sigmoid -> in [0, 1]
    assert jnp.all(out["confidence"] >= 0.0) and jnp.all(out["confidence"] <= 1.0)

    print("KERNEL_OK")
</pallas_src>

<mosaic_0001>
module attributes {stable_mosaic.version = 11 : i64} {
  func.func @wallet_recovery_kernel(%arg0: i32, %arg1: memref<8x32xf32, #tpu.memory_space<vmem>>, %arg2: memref<32x64xf32, #tpu.memory_space<vmem>>, %arg3: memref<3x64xf32, #tpu.memory_space<vmem>>, %arg4: memref<64x64xf32, #tpu.memory_space<vmem>>, %arg5: memref<3x64xf32, #tpu.memory_space<vmem>>, %arg6: memref<64x64xf32, #tpu.memory_space<vmem>>, %arg7: memref<1x64xf32, #tpu.memory_space<vmem>>, %arg8: memref<64x64xf32, #tpu.memory_space<vmem>>, %arg9: memref<3x64xf32, #tpu.memory_space<vmem>>, %arg10: memref<64x32xf32, #tpu.memory_space<vmem>>, %arg11: memref<3x32xf32, #tpu.memory_space<vmem>>, %arg12: memref<32x7xf32, #tpu.memory_space<vmem>>, %arg13: memref<1x7xf32, #tpu.memory_space<vmem>>, %arg14: memref<8x6xf32, #tpu.memory_space<vmem>>, %arg15: memref<8x1xf32, #tpu.memory_space<vmem>>) attributes {dimension_semantics = [#tpu.dimension_semantics<parallel>], iteration_bounds = array<i64: 1>, scalar_prefetch = 0 : i64, scratch_operands = 0 : i64, tpu.core_type = #tpu.core_type<tc>, window_params = [{transform_indices = @transform_0, window_bounds = array<i64: 8, 32>}, {pipeline_mode = #tpu.pipeline_mode<synchronous>, transform_indices = @transform_1, window_bounds = array<i64: 32, 64>}, {pipeline_mode = #tpu.pipeline_mode<synchronous>, transform_indices = @transform_2, window_bounds = array<i64: 3, 64>}, {pipeline_mode = #tpu.pipeline_mode<synchronous>, transform_indices = @transform_3, window_bounds = array<i64: 64, 64>}, {pipeline_mode = #tpu.pipeline_mode<synchronous>, transform_indices = @transform_4, window_bounds = array<i64: 3, 64>}, {pipeline_mode = #tpu.pipeline_mode<synchronous>, transform_indices = @transform_5, window_bounds = array<i64: 64, 64>}, {pipeline_mode = #tpu.pipeline_mode<synchronous>, transform_indices = @transform_6, window_bounds = array<i64: 1, 64>}, {pipeline_mode = #tpu.pipeline_mode<synchronous>, transform_indices = @transform_7, window_bounds = array<i64: 64, 64>}, {pipeline_mode = #tpu.pipeline_mode<synchronous>, transform_indices = @transform_8, window_bounds = array<i64: 3, 64>}, {pipeline_mode = #tpu.pipeline_mode<synchronous>, transform_indices = @transform_9, window_bounds = array<i64: 64, 32>}, {pipeline_mode = #tpu.pipeline_mode<synchronous>, transform_indices = @transform_10, window_bounds = array<i64: 3, 32>}, {pipeline_mode = #tpu.pipeline_mode<synchronous>, transform_indices = @transform_11, window_bounds = array<i64: 32, 7>}, {pipeline_mode = #tpu.pipeline_mode<synchronous>, transform_indices = @transform_12, window_bounds = array<i64: 1, 7>}, {transform_indices = @transform_13, window_bounds = array<i64: 8, 6>}, {transform_indices = @transform_14, window_bounds = array<i64: 8, 1>}]} {
    %c0 = arith.constant 0 : index
    %c0_0 = arith.constant 0 : index
    %0 = vector.load %arg1[%c0, %c0_0] : memref<8x32xf32, #tpu.memory_space<vmem>>, vector<8x32xf32>
    %c0_1 = arith.constant 0 : index
    %c0_2 = arith.constant 0 : index
    %1 = vector.load %arg3[%c0_1, %c0_2] : memref<3x64xf32, #tpu.memory_space<vmem>>, vector<3x64xf32>
    %c0_3 = arith.constant 0 : index
    %c0_4 = arith.constant 0 : index
    %2 = vector.load %arg2[%c0_3, %c0_4] : memref<32x64xf32, #tpu.memory_space<vmem>>, vector<32x64xf32>
    %cst = arith.constant dense<0.000000e+00> : vector<8x64xf32>
    %3 = tpu.matmul %0, %2, %cst {dimension_numbers = #tpu.dot_dimension_numbers<[1], [0], [0], [1], [0, 0, 1, 1], [], []>} : vector<8x32xf32>, vector<32x64xf32>, vector<8x64xf32> -> vector<8x64xf32>
    %4 = vector.extract_strided_slice %1 {offsets = [0, 0], sizes = [1, 64], strides = [1, 1]} : vector<3x64xf32> to vector<1x64xf32>
    %5 = vector.broadcast %4 : vector<1x64xf32> to vector<8x64xf32>
    %6 = arith.addf %3, %5 : vector<8x64xf32>
    %cst_5 = arith.constant dense<0.000000e+00> : vector<8xf32>
    %7 = vector.multi_reduction <add>, %6, %cst_5 [1] : vector<8x64xf32> to vector<8xf32>
    %8 = vector.shape_cast %7 : vector<8xf32> to vector<8x1xf32>
    %cst_6 = arith.constant 6.400000e+01 : f32
    %9 = vector.broadcast %cst_6 : f32 to vector<8x1xf32>
    %10 = arith.divf %8, %9 : vector<8x1xf32>
    %11 = vector.broadcast %10 : vector<8x1xf32> to vector<8x64xf32>
    %12 = arith.subf %6, %11 : vector<8x64xf32>
    %13 = arith.mulf %12, %12 : vector<8x64xf32>
    %cst_7 = arith.constant dense<0.000000e+00> : vector<8xf32>
    %14 = vector.multi_reduction <add>, %13, %cst_7 [1] : vector<8x64xf32> to vector<8xf32>
    %15 = vector.shape_cast %14 : vector<8xf32> to vector<8x1xf32>
    %cst_8 = arith.constant 6.400000e+01 : f32
    %16 = vector.broadcast %cst_8 : f32 to vector<8x1xf32>
    %17 = arith.divf %15, %16 : vector<8x1xf32>
    %cst_9 = arith.constant 9.99999974E-6 : f32
    %18 = vector.broadcast %cst_9 : f32 to vector<8x1xf32>
    %19 = arith.addf %17, %18 : vector<8x1xf32>
    %20 = math.rsqrt %19 : vector<8x1xf32>
    %21 = vector.broadcast %20 : vector<8x1xf32> to vector<8x64xf32>
    %22 = arith.mulf %12, %21 : vector<8x64xf32>
    %23 = vector.extract_strided_slice %1 {offsets = [1, 0], sizes = [1, 64], strides = [1, 1]} : vector<3x64xf32> to vector<1x64xf32>
    %24 = vector.broadcast %23 : vector<1x64xf32> to vector<8x64xf32>
    %25 = arith.mulf %22, %24 : vector<8x64xf32>
    %26 = vector.extract_strided_slice %1 {offsets = [2, 0], sizes = [1, 64], strides = [1, 1]} : vector<3x64xf32> to vector<1x64xf32>
    %27 = vector.broadcast %26 : vector<1x64xf32> to vector<8x64xf32>
    %28 = arith.addf %25, %27 : vector<8x64xf32>
    %cst_10 = arith.constant 0.000000e+00 : f32
    %29 = vector.broadcast %cst_10 : f32 to vector<8x64xf32>
    %30 = arith.maximumf %28, %29 : vector<8x64xf32>
    %c0_11 = arith.constant 0 : index
    %c0_12 = arith.constant 0 : index
    %31 = vector.load %arg5[%c0_11, %c0_12] : memref<3x64xf32, #tpu.memory_space<vmem>>, vector<3x64xf32>
    %c0_13 = arith.constant 0 : index
    %c0_14 = arith.constant 0 : index
    %32 = vector.load %arg4[%c0_13, %c0_14] : memref<64x64xf32, #tpu.memory_space<vmem>>, vector<64x64xf32>
    %cst_15 = arith.constant dense<0.000000e+00> : vector<8x64xf32>
    %33 = tpu.matmul %30, %32, %cst_15 {dimension_numbers = #tpu.dot_dimension_numbers<[1], [0], [0], [1], [0, 0, 1, 1], [], []>} : vector<8x64xf32>, vector<64x64xf32>, vector<8x64xf32> -> vector<8x64xf32>
    %34 = vector.extract_strided_slice %31 {offsets = [0, 0], sizes = [1, 64], strides = [1, 1]} : vector<3x64xf32> to vector<1x64xf32>
    %35 = vector.broadcast %34 : vector<1x64xf32> to vector<8x64xf32>
    %36 = arith.addf %33, %35 : vector<8x64xf32>
    %cst_16 = arith.constant dense<0.000000e+00> : vector<8xf32>
    %37 = vector.multi_reduction <add>, %36, %cst_16 [1] : vector<8x64xf32> to vector<8xf32>
    %38 = vector.shape_cast %37 : vector<8xf32> to vector<8x1xf32>
    %cst_17 = arith.constant 6.400000e+01 : f32
    %39 = vector.broadcast %cst_17 : f32 to vector<8x1xf32>
    %40 = arith.divf %38, %39 : vector<8x1xf32>
    %41 = vector.broadcast %40 : vector<8x1xf32> to vector<8x64xf32>
    %42 = arith.subf %36, %41 : vector<8x64xf32>
    %43 = arith.mulf %42, %42 : vector<8x64xf32>
    %cst_18 = arith.constant dense<0.000000e+00> : vector<8xf32>
    %44 = vector.multi_reduction <add>, %43, %cst_18 [1] : vector<8x64xf32> to vector<8xf32>
    %45 = vector.shape_cast %44 : vector<8xf32> to vector<8x1xf32>
    %cst_19 = arith.constant 6.400000e+01 : f32
    %46 = vector.broadcast %cst_19 : f32 to vector<8x1xf32>
    %47 = arith.divf %45, %46 : vector<8x1xf32>
    %cst_20 = arith.constant 9.99999974E-6 : f32
    %48 = vector.broadcast %cst_20 : f32 to vector<8x1xf32>
    %49 = arith.addf %47, %48 : vector<8x1xf32>
    %50 = math.rsqrt %49 : vector<8x1xf32>
    %51 = vector.broadcast %50 : vector<8x1xf32> to vector<8x64xf32>
    %52 = arith.mulf %42, %51 : vector<8x64xf32>
    %53 = vector.extract_strided_slice %31 {offsets = [1, 0], sizes = [1, 64], strides = [1, 1]} : vector<3x64xf32> to vector<1x64xf32>
    %54 = vector.broadcast %53 : vector<1x64xf32> to vector<8x64xf32>
    %55 = arith.mulf %52, %54 : vector<8x64xf32>
    %56 = vector.extract_strided_slice %31 {offsets = [2, 0], sizes = [1, 64], strides = [1, 1]} : vector<3x64xf32> to vector<1x64xf32>
    %57 = vector.broadcast %56 : vector<1x64xf32> to vector<8x64xf32>
    %58 = arith.addf %55, %57 : vector<8x64xf32>
    %cst_21 = arith.constant 0.000000e+00 : f32
    %59 = vector.broadcast %cst_21 : f32 to vector<8x64xf32>
    %60 = arith.maximumf %58, %59 : vector<8x64xf32>
    %c0_22 = arith.constant 0 : index
    %c0_23 = arith.constant 0 : index
    %61 = vector.load %arg6[%c0_22, %c0_23] : memref<64x64xf32, #tpu.memory_space<vmem>>, vector<64x64xf32>
    %cst_24 = arith.constant dense<0.000000e+00> : vector<8x64xf32>
    %62 = tpu.matmul %60, %61, %cst_24 {dimension_numbers = #tpu.dot_dimension_numbers<[1], [0], [0], [1], [0, 0, 1, 1], [], []>} : vector<8x64xf32>, vector<64x64xf32>, vector<8x64xf32> -> vector<8x64xf32>
    %c0_25 = arith.constant 0 : index
    %c0_26 = arith.constant 0 : index
    %63 = vector.load %arg7[%c0_25, %c0_26] : memref<1x64xf32, #tpu.memory_space<vmem>>, vector<1x64xf32>
    %64 = vector.broadcast %63 : vector<1x64xf32> to vector<8x64xf32>
    %65 = arith.addf %62, %64 : vector<8x64xf32>
    %c0_27 = arith.constant 0 : index
    %c0_28 = arith.constant 0 : index
    %66 = vector.load %arg9[%c0_27, %c0_28] : memref<3x64xf32, #tpu.memory_space<vmem>>, vector<3x64xf32>
    %c0_29 = arith.constant 0 : index
    %c0_30 = arith.constant 0 : index
    %67 = vector.load %arg8[%c0_29, %c0_30] : memref<64x64xf32, #tpu.memory_space<vmem>>, vector<64x64xf32>
    %cst_31 = arith.constant dense<0.000000e+00> : vector<8x64xf32>
    %68 = tpu.matmul %65, %67, %cst_31 {dimension_numbers = #tpu.dot_dimension_numbers<[1], [0], [0], [1], [0, 0, 1, 1], [], []>} : vector<8x64xf32>, vector<64x64xf32>, vector<8x64xf32> -> vector<8x64xf32>
    %69 = vector.extract_strided_slice %66 {offsets = [0, 0], sizes = [1, 64], strides = [1, 1]} : vector<3x64xf32> to vector<1x64xf32>
    %70 = vector.broadcast %69 : vector<1x64xf32> to vector<8x64xf32>
    %71 = arith.addf %68, %70 : vector<8x64xf32>
    %cst_32 = arith.constant dense<0.000000e+00> : vector<8xf32>
    %72 = vector.multi_reduction <add>, %71, %cst_32 [1] : vector<8x64xf32> to vector<8xf32>
    %73 = vector.shape_cast %72 : vector<8xf32> to vector<8x1xf32>
    %cst_33 = arith.constant 6.400000e+01 : f32
    %74 = vector.broadcast %cst_33 : f32 to vector<8x1xf32>
    %75 = arith.divf %73, %74 : vector<8x1xf32>
    %76 = vector.broadcast %75 : vector<8x1xf32> to vector<8x64xf32>
    %77 = arith.subf %71, %76 : vector<8x64xf32>
    %78 = arith.mulf %77, %77 : vector<8x64xf32>
    %cst_34 = arith.constant dense<0.000000e+00> : vector<8xf32>
    %79 = vector.multi_reduction <add>, %78, %cst_34 [1] : vector<8x64xf32> to vector<8xf32>
    %80 = vector.shape_cast %79 : vector<8xf32> to vector<8x1xf32>
    %cst_35 = arith.constant 6.400000e+01 : f32
    %81 = vector.broadcast %cst_35 : f32 to vector<8x1xf32>
    %82 = arith.divf %80, %81 : vector<8x1xf32>
    %cst_36 = arith.constant 9.99999974E-6 : f32
    %83 = vector.broadcast %cst_36 : f32 to vector<8x1xf32>
    %84 = arith.addf %82, %83 : vector<8x1xf32>
    %85 = math.rsqrt %84 : vector<8x1xf32>
    %86 = vector.broadcast %85 : vector<8x1xf32> to vector<8x64xf32>
    %87 = arith.mulf %77, %86 : vector<8x64xf32>
    %88 = vector.extract_strided_slice %66 {offsets = [1, 0], sizes = [1, 64], strides = [1, 1]} : vector<3x64xf32> to vector<1x64xf32>
    %89 = vector.broadcast %88 : vector<1x64xf32> to vector<8x64xf32>
    %90 = arith.mulf %87, %89 : vector<8x64xf32>
    %91 = vector.extract_strided_slice %66 {offsets = [2, 0], sizes = [1, 64], strides = [1, 1]} : vector<3x64xf32> to vector<1x64xf32>
    %92 = vector.broadcast %91 : vector<1x64xf32> to vector<8x64xf32>
    %93 = arith.addf %90, %92 : vector<8x64xf32>
    %cst_37 = arith.constant 0.000000e+00 : f32
    %94 = vector.broadcast %cst_37 : f32 to vector<8x64xf32>
    %95 = arith.maximumf %93, %94 : vector<8x64xf32>
    %c0_38 = arith.constant 0 : index
    %c0_39 = arith.constant 0 : index
    %96 = vector.load %arg11[%c0_38, %c0_39] : memref<3x32xf32, #tpu.memory_space<vmem>>, vector<3x32xf32>
    %c0_40 = arith.constant 0 : index
    %c0_41 = arith.constant 0 : index
    %97 = vector.load %arg10[%c0_40, %c0_41] : memref<64x32xf32, #tpu.memory_space<vmem>>, vector<64x32xf32>
    %cst_42 = arith.constant dense<0.000000e+00> : vector<8x32xf32>
    %98 = tpu.matmul %95, %97, %cst_42 {dimension_numbers = #tpu.dot_dimension_numbers<[1], [0], [0], [1], [0, 0, 1, 1], [], []>} : vector<8x64xf32>, vector<64x32xf32>, vector<8x32xf32> -> vector<8x32xf32>
    %99 = vector.extract_strided_slice %96 {offsets = [0, 0], sizes = [1, 32], strides = [1, 1]} : vector<3x32xf32> to vector<1x32xf32>
    %100 = vector.broadcast %99 : vector<1x32xf32> to vector<8x32xf32>
    %101 = arith.addf %98, %100 : vector<8x32xf32>
    %cst_43 = arith.constant dense<0.000000e+00> : vector<8xf32>
    %102 = vector.multi_reduction <add>, %101, %cst_43 [1] : vector<8x32xf32> to vector<8xf32>
    %103 = vector.shape_cast %102 : vector<8xf32> to vector<8x1xf32>
    %cst_44 = arith.constant 3.200000e+01 : f32
    %104 = vector.broadcast %cst_44 : f32 to vector<8x1xf32>
    %105 = arith.divf %103, %104 : vector<8x1xf32>
    %106 = vector.broadcast %105 : vector<8x1xf32> to vector<8x32xf32>
    %107 = arith.subf %101, %106 : vector<8x32xf32>
    %108 = arith.mulf %107, %107 : vector<8x32xf32>
    %cst_45 = arith.constant dense<0.000000e+00> : vector<8xf32>
    %109 = vector.multi_reduction <add>, %108, %cst_45 [1] : vector<8x32xf32> to vector<8xf32>
    %110 = vector.shape_cast %109 : vector<8xf32> to vector<8x1xf32>
    %cst_46 = arith.constant 3.200000e+01 : f32
    %111 = vector.broadcast %cst_46 : f32 to vector<8x1xf32>
    %112 = arith.divf %110, %111 : vector<8x1xf32>
    %cst_47 = arith.constant 9.99999974E-6 : f32
    %113 = vector.broadcast %cst_47 : f32 to vector<8x1xf32>
    %114 = arith.addf %112, %113 : vector<8x1xf32>
    %115 = math.rsqrt %114 : vector<8x1xf32>
    %116 = vector.broadcast %115 : vector<8x1xf32> to vector<8x32xf32>
    %117 = arith.mulf %107, %116 : vector<8x32xf32>
    %118 = vector.extract_strided_slice %96 {offsets = [1, 0], sizes = [1, 32], strides = [1, 1]} : vector<3x32xf32> to vector<1x32xf32>
    %119 = vector.broadcast %118 : vector<1x32xf32> to vector<8x32xf32>
    %120 = arith.mulf %117, %119 : vector<8x32xf32>
    %121 = vector.extract_strided_slice %96 {offsets = [2, 0], sizes = [1, 32], strides = [1, 1]} : vector<3x32xf32> to vector<1x32xf32>
    %122 = vector.broadcast %121 : vector<1x32xf32> to vector<8x32xf32>
    %123 = arith.addf %120, %122 : vector<8x32xf32>
    %cst_48 = arith.constant 0.000000e+00 : f32
    %124 = vector.broadcast %cst_48 : f32 to vector<8x32xf32>
    %125 = arith.maximumf %123, %124 : vector<8x32xf32>
    %c0_49 = arith.constant 0 : index
    %c0_50 = arith.constant 0 : index
    %126 = vector.load %arg12[%c0_49, %c0_50] : memref<32x7xf32, #tpu.memory_space<vmem>>, vector<32x7xf32>
    %cst_51 = arith.constant dense<0.000000e+00> : vector<8x7xf32>
    %127 = tpu.matmul %125, %126, %cst_51 {dimension_numbers = #tpu.dot_dimension_numbers<[1], [0], [0], [1], [0, 0, 1, 1], [], []>} : vector<8x32xf32>, vector<32x7xf32>, vector<8x7xf32> -> vector<8x7xf32>
    %c0_52 = arith.constant 0 : index
    %c0_53 = arith.constant 0 : index
    %128 = vector.load %arg13[%c0_52, %c0_53] : memref<1x7xf32, #tpu.memory_space<vmem>>, vector<1x7xf32>
    %129 = vector.broadcast %128 : vector<1x7xf32> to vector<8x7xf32>
    %130 = arith.addf %127, %129 : vector<8x7xf32>
    %131 = vector.extract_strided_slice %130 {offsets = [0, 0], sizes = [8, 6], strides = [1, 1]} : vector<8x7xf32> to vector<8x6xf32>
    %132 = vector.extract_strided_slice %130 {offsets = [0, 6], sizes = [8, 1], strides = [1, 1]} : vector<8x7xf32> to vector<8x1xf32>
    %cst_54 = arith.constant dense<0xFF800000> : vector<8xf32>
    %133 = vector.multi_reduction <maximumf>, %131, %cst_54 [1] : vector<8x6xf32> to vector<8xf32>
    %134 = vector.shape_cast %133 : vector<8xf32> to vector<8x1xf32>
    %135 = vector.broadcast %134 : vector<8x1xf32> to vector<8x6xf32>
    %136 = arith.subf %131, %135 : vector<8x6xf32>
    %137 = math.exp %136 : vector<8x6xf32>
    %cst_55 = arith.constant dense<0.000000e+00> : vector<8xf32>
    %138 = vector.multi_reduction <add>, %137, %cst_55 [1] : vector<8x6xf32> to vector<8xf32>
    %139 = vector.shape_cast %138 : vector<8xf32> to vector<8x1xf32>
    %140 = tpu.reciprocal %139 {approx = true} : vector<8x1xf32> -> vector<8x1xf32>
    %141 = vector.broadcast %140 : vector<8x1xf32> to vector<8x6xf32>
    %142 = arith.mulf %137, %141 : vector<8x6xf32>
    %c0_56 = arith.constant 0 : index
    %c0_57 = arith.constant 0 : index
    %143 = vector.load %arg14[%c0_56, %c0_57] : memref<8x6xf32, #tpu.memory_space<vmem>>, vector<8x6xf32>
    tpu.vector_store %arg14[%c0_56, %c0_57], %142 {strides = array<i32>} : memref<8x6xf32, #tpu.memory_space<vmem>>, vector<8x6xf32>,
    %cst_58 = arith.constant 5.000000e-01 : f32
    %144 = vector.broadcast %cst_58 : f32 to vector<8x1xf32>
    %145 = arith.mulf %144, %132 : vector<8x1xf32>
    %146 = math.tanh %145 : vector<8x1xf32>
    %cst_59 = arith.constant 5.000000e-01 : f32
    %147 = vector.broadcast %cst_59 : f32 to vector<8x1xf32>
    %148 = arith.mulf %147, %146 : vector<8x1xf32>
    %cst_60 = arith.constant 5.000000e-01 : f32
    %149 = vector.broadcast %cst_60 : f32 to vector<8x1xf32>
    %150 = arith.addf %148, %149 : vector<8x1xf32>
    %c0_61 = arith.constant 0 : index
    %c0_62 = arith.constant 0 : index
    %151 = vector.load %arg15[%c0_61, %c0_62] : memref<8x1xf32, #tpu.memory_space<vmem>>, vector<8x1xf32>
    tpu.vector_store %arg15[%c0_61, %c0_62], %150 {strides = array<i32>} : memref<8x1xf32, #tpu.memory_space<vmem>>, vector<8x1xf32>,
    return
  }
  func.func @transform_0(%arg0: i32) -> (i32, i32) {
    %c0_i32 = arith.constant 0 : i32
    %c0_i32_0 = arith.constant 0 : i32
    return %arg0, %c0_i32 : i32, i32
  }
  func.func @transform_1(%arg0: i32) -> (i32, i32) {
    %c0_i32 = arith.constant 0 : i32
    %c0_i32_0 = arith.constant 0 : i32
    %c0_i32_1 = arith.constant 0 : i32
    return %c0_i32, %c0_i32_0 : i32, i32
  }
  func.func @transform_2(%arg0: i32) -> (i32, i32) {
    %c0_i32 = arith.constant 0 : i32
    %c0_i32_0 = arith.constant 0 : i32
    %c0_i32_1 = arith.constant 0 : i32
    return %c0_i32, %c0_i32_0 : i32, i32
  }
  func.func @transform_3(%arg0: i32) -> (i32, i32) {
    %c0_i32 = arith.constant 0 : i32
    %c0_i32_0 = arith.constant 0 : i32
    %c0_i32_1 = arith.constant 0 : i32
    return %c0_i32, %c0_i32_0 : i32, i32
  }
  func.func @transform_4(%arg0: i32) -> (i32, i32) {
    %c0_i32 = arith.constant 0 : i32
    %c0_i32_0 = arith.constant 0 : i32
    %c0_i32_1 = arith.constant 0 : i32
    return %c0_i32, %c0_i32_0 : i32, i32
  }
  func.func @transform_5(%arg0: i32) -> (i32, i32) {
    %c0_i32 = arith.constant 0 : i32
    %c0_i32_0 = arith.constant 0 : i32
    %c0_i32_1 = arith.constant 0 : i32
    return %c0_i32, %c0_i32_0 : i32, i32
  }
  func.func @transform_6(%arg0: i32) -> (i32, i32) {
    %c0_i32 = arith.constant 0 : i32
    %c0_i32_0 = arith.constant 0 : i32
    %c0_i32_1 = arith.constant 0 : i32
    return %c0_i32, %c0_i32_0 : i32, i32
  }
  func.func @transform_7(%arg0: i32) -> (i32, i32) {
    %c0_i32 = arith.constant 0 : i32
    %c0_i32_0 = arith.constant 0 : i32
    %c0_i32_1 = arith.constant 0 : i32
    return %c0_i32, %c0_i32_0 : i32, i32
  }
  func.func @transform_8(%arg0: i32) -> (i32, i32) {
    %c0_i32 = arith.constant 0 : i32
    %c0_i32_0 = arith.constant 0 : i32
    %c0_i32_1 = arith.constant 0 : i32
    return %c0_i32, %c0_i32_0 : i32, i32
  }
  func.func @transform_9(%arg0: i32) -> (i32, i32) {
    %c0_i32 = arith.constant 0 : i32
    %c0_i32_0 = arith.constant 0 : i32
    %c0_i32_1 = arith.constant 0 : i32
    return %c0_i32, %c0_i32_0 : i32, i32
  }
  func.func @transform_10(%arg0: i32) -> (i32, i32) {
    %c0_i32 = arith.constant 0 : i32
    %c0_i32_0 = arith.constant 0 : i32
    %c0_i32_1 = arith.constant 0 : i32
    return %c0_i32, %c0_i32_0 : i32, i32
  }
  func.func @transform_11(%arg0: i32) -> (i32, i32) {
    %c0_i32 = arith.constant 0 : i32
    %c0_i32_0 = arith.constant 0 : i32
    %c0_i32_1 = arith.constant 0 : i32
    return %c0_i32, %c0_i32_0 : i32, i32
  }
  func.func @transform_12(%arg0: i32) -> (i32, i32) {
    %c0_i32 = arith.constant 0 : i32
    %c0_i32_0 = arith.constant 0 : i32
    %c0_i32_1 = arith.constant 0 : i32
    return %c0_i32, %c0_i32_0 : i32, i32
  }
  func.func @transform_13(%arg0: i32) -> (i32, i32) {
    %c0_i32 = arith.constant 0 : i32
    %c0_i32_0 = arith.constant 0 : i32
    return %arg0, %c0_i32 : i32, i32
  }
  func.func @transform_14(%arg0: i32) -> (i32, i32) {
    %c0_i32 = arith.constant 0 : i32
    %c0_i32_0 = arith.constant 0 : i32
    return %arg0, %c0_i32 : i32, i32
  }
}

</mosaic_0001>

<bundles_post_ra>
// kernel: wallet_recovery_forward.1
= control target key start
LH: loop header
LB: loop body
LE: loop exit
PB: predicated region body
PF: predicated region fallthrough
CT: control target
= control target key end

     0   :  { %20 = vsyncpa [#allocation3], 0  ;;  %s1523_s0 = inlined_call_operand.hbm [shape: f32[8,32], index: 0, kind: input, shape index: {}]   ;;  %s1524_s1 = inlined_call_operand.hbm [shape: f32[32,64], index: 1, kind: input, shape index: {}]   ;;  %s1525_s2 = inlined_call_operand.hbm [shape: f32[3,64], index: 2, kind: input, shape index: {}]   ;;  %s1526_s3 = inlined_call_operand.vmem [shape: f32[64,64], index: 3, kind: input, shape index: {}]   ;;  %s1527_s4 = inlined_call_operand.hbm [shape: f32[3,64], index: 4, kind: input, shape index: {}]   ;;  %s1528_s5 = inlined_call_operand.vmem [shape: f32[64,64], index: 5, kind: input, shape index: {}]   ;;  %s1529_s6 = inlined_call_operand.vmem [shape: f32[1,64], index: 6, kind: input, shape index: {}]   ;;  %s1530_s7 = inlined_call_operand.hbm [shape: f32[64,64], index: 7, kind: input, shape index: {}]   ;;  %s1531_s8 = inlined_call_operand.hbm [shape: f32[3,64], index: 8, kind: input, shape index: {}]   ;;  %s1532_s9 = inlined_call_operand.vmem [shape: f32[64,32], index: 9, kind: input, shape index: {}]   ;;  %s1533_s10 = inlined_call_operand.vmem [shape: f32[3,32], index: 10, kind: input, shape index: {}]   ;;  %s1534_s11 = inlined_call_operand.vmem [shape: f32[32,7], index: 11, kind: input, shape index: {}]   ;;  %s1535_s12 = inlined_call_operand.vmem [shape: f32[1,7], index: 12, kind: input, shape index: {}]   ;;  %s1536_s13 = inlined_call_operand.hbm [shape: f32[8,6], index: 13, kind: output, shape index: {0}]   ;;  %s1537_s14 = inlined_call_operand.vmem [shape: f32[8,1], index: 14, kind: output, shape index: {1}]  }
   0x1   :  { %21 = vsyncpa [#allocation6], 0 }
   0x2   :  { %22 = vsyncpa [#allocation9], 0 }
   0x3   :  { %23 = vsyncpa [#allocation12], 0 }
   0x4   :  { %24 = vsyncpa [#allocation4], 0  ;;  %s1182_s29 = smov [#allocation5]   ;;  %s1018_s17 = scalar_lea.hbm %s1524_s1, 512 }
   0x5   :  { %s40_s30 = sshll.u32 %s1182_s29, 4  ;;  %p1019_p0 = scmp.ne.s32.totalorder %s1524_s1, %s1018_s17  ;;  %s41_s30 = int_to_ptr.vmem [resolvable:$true] %s40_s30 }
   0x6   :  { %p1022_p1 = scmp.lt.u32.totalorder %s1018_s17, %s1524_s1 }
   0x8   :  { %p1024_p2 = pnand %p1022_p1, %p1019_p0 }
   0xa   :  { %1027 = shalt.err (!%p1024_p2)
}
   0xb   :  { %s1028_s22 = scalar_lea.vmem %s41_s30, 512  ;;  %p1033_p4 = scmp.lt.s32.totalorder %s41_s30, %s41_s30 }
   0xc   :  { %p1029_p3 = scmp.ne.s32.totalorder %s41_s30, %s1028_s22  ;;  %p1034_p5 = scmp.lt.s32.totalorder %s1028_s22, %s1028_s22 }
   0xe   :  { %p1035_p6 = por %p1034_p5, %p1033_p4 }
  0x10   :  { %p1036_p7 = pnand %p1035_p6, %p1029_p3 }
  0x12   :  { %1039 = shalt.err (!%p1036_p7)
}
  0x13   :  { %s1183_s23 = smov 128   ;;  %s1184_s24 = smov 8  }
  0x14   :  { %46 = dma.hbm_to_vmem [thread:$0]  %s1524_s1, 512, %s41_s30, [#allocation6], %s1183_s23, %s1183_s23, %s1184_s24  }
  0x15   :  { %s1185_s27 = smov [#allocation8]   ;;  %s1186_s29 = smov [#allocation2]  }
  0x16   :  { %s65_s28 = sshll.u32 %s1185_s27, 4  ;;  %s31_s15 = sshll.u32 %s1186_s29, 4  ;;  %s66_s28 = int_to_ptr.vmem [resolvable:$true] %s65_s28  ;;  %s32_s15 = int_to_ptr.vmem [resolvable:$true] %s31_s15 }
  0x17   :  { %s1040_s18 = scalar_lea.hbm %s1527_s4, 64 }
  0x18   :  { %p1041_p8 = scmp.ne.s32.totalorder %s1527_s4, %s1040_s18  ;;  %p1044_p9 = scmp.lt.u32.totalorder %s1040_s18, %s1527_s4 }
  0x1a   :  { %p1046_p10 = pnand %p1044_p9, %p1041_p8 }
  0x1c   :  { %1049 = shalt.err (!%p1046_p10)
}
  0x1d   :  { %s1050_s1 = scalar_lea.vmem %s66_s28, 64  ;;  %p1055_p12 = scmp.lt.s32.totalorder %s66_s28, %s66_s28 }
  0x1e   :  { %p1051_p11 = scmp.ne.s32.totalorder %s66_s28, %s1050_s1  ;;  %p1056_p13 = scmp.lt.s32.totalorder %s1050_s1, %s1050_s1 }
  0x20   :  { %p1057_p0 = por %p1056_p13, %p1055_p12 }
  0x22   :  { %p1058_p1 = pnand %p1057_p0, %p1051_p11 }
  0x24   :  { %1061 = shalt.err (!%p1058_p1)
}
  0x25   :  { %68 = dma.hbm_to_vmem [thread:$0]  %s1527_s4, 64, %s66_s28, [#allocation9]  }
  0x26   :  { %s1062_s29 = scalar_lea.hbm %s1523_s0, 128 }
  0x27   :  { %p1063_p2 = scmp.ne.s32.totalorder %s1523_s0, %s1062_s29  ;;  %p1066_p3 = scmp.lt.u32.totalorder %s1062_s29, %s1523_s0 }
  0x29   :  { %p1068_p4 = pnand %p1066_p3, %p1063_p2 }
  0x2b   :  { %1071 = shalt.err (!%p1068_p4)
}
  0x2c   :  { %s1072_s20 = scalar_lea.vmem %s32_s15, 128  ;;  %p1077_p6 = scmp.lt.s32.totalorder %s32_s15, %s32_s15 }
  0x2d   :  { %p1073_p5 = scmp.ne.s32.totalorder %s32_s15, %s1072_s20  ;;  %p1078_p7 = scmp.lt.s32.totalorder %s1072_s20, %s1072_s20 }
  0x2f   :  { %p1079_p8 = por %p1078_p7, %p1077_p6 }
  0x31   :  { %p1080_p9 = pnand %p1079_p8, %p1073_p5 }
  0x33   :  { %1083 = shalt.err (!%p1080_p9)
}
  0x34   :  { %34 = dma.hbm_to_vmem [thread:$0]  %s1523_s0, 128, %s32_s15, [#allocation3]  }
  0x35   :  { %s1187_s21 = smov [#allocation7]   ;;  %s1188_s1 = smov [#allocation10]  }
  0x36   :  { %s53_s22 = sshll.u32 %s1187_s21, 4  ;;  %s78_s30 = sshll.u32 %s1188_s1, 4  ;;  %s54_s22 = int_to_ptr.vmem [resolvable:$true] %s53_s22  ;;  %s79_s30 = int_to_ptr.vmem [resolvable:$true] %s78_s30 }
  0x37   :  { %s1084_s27 = scalar_lea.hbm %s1525_s2, 64 }
  0x38   :  { %p1085_p10 = scmp.ne.s32.totalorder %s1525_s2, %s1084_s27  ;;  %p1088_p11 = scmp.lt.u32.totalorder %s1084_s27, %s1525_s2 }
  0x3a   :  { %p1090_p12 = pnand %p1088_p11, %p1085_p10 }
  0x3c   :  { %1093 = shalt.err (!%p1090_p12)
}
  0x3d   :  { %s1094_s0 = scalar_lea.vmem %s54_s22, 64  ;;  %p1099_p0 = scmp.lt.s32.totalorder %s54_s22, %s54_s22 }
  0x3e   :  { %p1095_p13 = scmp.ne.s32.totalorder %s54_s22, %s1094_s0  ;;  %p1100_p1 = scmp.lt.s32.totalorder %s1094_s0, %s1094_s0 }
  0x40   :  { %p1101_p2 = por %p1100_p1, %p1099_p0 }
  0x42   :  { %p1102_p3 = pnand %p1101_p2, %p1095_p13 }
  0x44   :  { %1105 = shalt.err (!%p1102_p3)
}
  0x45   :  { %56 = dma.hbm_to_vmem [thread:$0]  %s1525_s2, 64, %s54_s22, [#allocation6]  }
  0x46   :  { %s1106_s28 = scalar_lea.hbm %s1530_s7, 1024 }
  0x47   :  { %p1107_p4 = scmp.ne.s32.totalorder %s1530_s7, %s1106_s28  ;;  %p1110_p5 = scmp.lt.u32.totalorder %s1106_s28, %s1530_s7 }
  0x49   :  { %p1112_p6 = pnand %p1110_p5, %p1107_p4 }
  0x4b   :  { %1115 = shalt.err (!%p1112_p6)
}
  0x4c   :  { %s1116_s27 = scalar_lea.vmem %s79_s30, 1024  ;;  %p1121_p8 = scmp.lt.s32.totalorder %s79_s30, %s79_s30 }
  0x4d   :  { %p1117_p7 = scmp.ne.s32.totalorder %s79_s30, %s1116_s27  ;;  %p1122_p9 = scmp.lt.s32.totalorder %s1116_s27, %s1116_s27 }
  0x4f   :  { %p1123_p10 = por %p1122_p9, %p1121_p8 }
  0x51   :  { %p1124_p11 = pnand %p1123_p10, %p1117_p7 }
  0x53   :  { %1127 = shalt.err (!%p1124_p11)
}
  0x54   :  { %84 = dma.hbm_to_vmem [thread:$0]  %s1530_s7, 1024, %s79_s30, [#allocation9], %s1183_s23, %s1183_s23, %s1184_s24  }
  0x55   :  { %s1189_s29 = smov [#allocation11]   ;;  %s1128_s0 = scalar_lea.hbm %s1531_s8, 64 }
  0x56   :  { %s91_s16 = sshll.u32 %s1189_s29, 4  ;;  %p1129_p12 = scmp.ne.s32.totalorder %s1531_s8, %s1128_s0  ;;  %s92_s16 = int_to_ptr.vmem [resolvable:$true] %s91_s16 }
  0x57   :  { %p1132_p13 = scmp.lt.u32.totalorder %s1128_s0, %s1531_s8 }
  0x59   :  { %p1134_p0 = pnand %p1132_p13, %p1129_p12 }
  0x5b   :  { %1137 = shalt.err (!%p1134_p0)
}
  0x5c   :  { %s1138_s28 = scalar_lea.vmem %s92_s16, 64  ;;  %p1143_p2 = scmp.lt.s32.totalorder %s92_s16, %s92_s16 }
  0x5d   :  { %p1139_p1 = scmp.ne.s32.totalorder %s92_s16, %s1138_s28  ;;  %p1144_p3 = scmp.lt.s32.totalorder %s1138_s28, %s1138_s28 }
  0x5f   :  { %p1145_p4 = por %p1144_p3, %p1143_p2 }
  0x61   :  { %p1146_p5 = pnand %p1145_p4, %p1139_p1 }
  0x63   :  { %1149 = shalt.err (!%p1146_p5)
}
  0x64   :  { %94 = dma.hbm_to_vmem [thread:$0]  %s1531_s8, 64, %s92_s16, [#allocation12]  }
  0x65   :  { %1172 = dma.done.wait [#allocation3], 128  }
  0x66   :  { %1173 = vsyncadd [#allocation3], 4294967168 }
  0x67   :  { %1174 = dma.done.wait [#allocation6], 576  }
  0x68   :  { %1175 = vsyncadd [#allocation6], 4294966720 }
  0x69   :  { %1176 = dma.done.wait [#allocation9], 1088  }
  0x6a   :  { %1177 = vsyncadd [#allocation9], 4294966208 }
  0x6b   :  { %1178 = dma.done.wait [#allocation12], 64  }
  0x6c   :  { %1179 = vsyncadd [#allocation12], 4294967232  ;;  %v1190_v0 = vmov 0.0|0.0   ;;  %vm1191_vm0 = vmmov 0   ;;  %v1192_v1 = vmov 0.0   ;;  %v123_v2 = vld [vmem:[#allocation5] sm:$0xff]  ;;  %v127_v9 = vlaneseq }
  0x6d   :  { %931 = vmatprep.subr.bf16.mxu0 %v1190_v0  ;;  %841 = vmatprep.mubr.msk.f32.mxu0 %vm1191_vm0, %v1192_v1  ;;  %v124_v3 = vld [vmem:[#allocation5 + $0x8] sm:$0xff]  ;;  %v125_v4 = vld [vmem:[#allocation5 + $0x10] sm:$0xff]  ;;  %v126_v6 = vld [vmem:[#allocation5 + $0x18] sm:$0xff]  ;;  %vm131_vm1 = vcmask 261120   ;;  %vm205_vm2 = vcmask 523264   ;;  %vm734_vm3 = vcmask 48128  }
  0x6e   :  { %937 = vmatprep.subr.bf16.mxu1 %v1190_v0  ;;  %860 = vmatprep.mubr.msk.f32.mxu1 %vm1191_vm0, %v1192_v1  ;;  %v932_v5 = vpack.c.bf16 %v124_v3, %v123_v2  ;;  %v935_v7 = vpack.c.bf16 %v126_v6, %v125_v4  ;;  %v121_v8 = vld [vmem:[#allocation2] sm:$0xff]  ;;  %v128_v10 = vshrl.u32 %v127_v9, 7  ;;  %v122_v12 = vld [vmem:[#allocation7] sm:$0x7]  ;;  %v234_v25 = vld [vmem:[%s1526_s3 + $0x10] sm:$0xff]  ;;  %vm755_vm4 = vcmask 7168  }
  0x6f   :  { %v232_v23 = vld [vmem:[%s1526_s3] sm:$0xff]  ;;  %v233_v24 = vld [vmem:[%s1526_s3 + $0x8] sm:$0xff]  ;;  %v235_v27 = vld [vmem:[%s1526_s3 + $0x18] sm:$0xff]  ;;  %s1194_s16 = smov [#allocation13]  }
  0x70   :  { %933 = vmatpush3.bf16.msra.mxu0 %v932_v5  ;;  %v1359_v11 = vsub.s32 0, %v128_v10  ;;  %v938_v26 = vpack.c.bf16 %v233_v24, %v232_v23  ;;  %v941_v28 = vpack.c.bf16 %v235_v27, %v234_v25  ;;  %v236_v29 = vld [vmem:[%s1526_s3 + $0x20] sm:$0xff]  ;;  %v237_v30 = vld [vmem:[%s1526_s3 + $0x28] sm:$0xff]  ;;  %v238_v32 = vld [vmem:[%s1526_s3 + $0x30] sm:$0xff]  ;;  %v1392_v38 = vsub.s32 1, %v128_v10  ;;  %s763_s17 = sshll.u32 %s1194_s16, 4  ;;  %s764_s17 = int_to_ptr.vmem [resolvable:$true] %s763_s17 }
  0x71   :  { %934 = vmatprep.subr.bf16.mxu0 %v1190_v0  ;;  %v944_v31 = vpack.c.bf16 %v237_v30, %v236_v29  ;;  %v239_v33 = vld [vmem:[%s1526_s3 + $0x38] sm:$0xff]  ;;  %v1394_v39 = vsub.s32 2, %v128_v10  ;;  %v231_v47 = vld [vmem:[#allocation8] sm:$0x7]  ;;  %v341_v58 = vld [vmem:[%s1528_s5] sm:$0xff]  ;;  %s1150_s18 = scalar_lea.vmem %s764_s17, 128  ;;  %p1155_p7 = scmp.lt.s32.totalorder %s764_s17, %s764_s17 }
  0x72   :  { %v130_v13 = vrot.slane %v122_v12, %v1359_v11  ;;  %939 = vmatpush3.bf16.msra.mxu1 %v938_v26  ;;  %v947_v34 = vpack.c.bf16 %v239_v33, %v238_v32  ;;  %v223_v40 = vrot.slane %v122_v12, %v1392_v38  ;;  %v243_v48 = vrot.slane %v231_v47, %v1359_v11  ;;  %v342_v59 = vld [vmem:[%s1528_s5 + $0x8] sm:$0xff]  ;;  %v343_v61 = vld [vmem:[%s1528_s5 + $0x10] sm:$0xff]  ;;  %v344_v62 = vld [vmem:[%s1528_s5 + $0x18] sm:$0xff]  ;;  %p1151_p6 = scmp.ne.s32.totalorder %s764_s17, %s1150_s18  ;;  %p1156_p8 = scmp.lt.s32.totalorder %s1150_s18, %s1150_s18 }
  0x73   :  { %940 = vmatprep.subr.bf16.mxu1 %v1190_v0  ;;  %v228_v42 = vrot.slane %v122_v12, %v1394_v39  ;;  %v950_v60 = vpack.c.bf16 %v342_v59, %v341_v58  ;;  %v953_v63 = vpack.c.bf16 %v344_v62, %v343_v61  ;;  %v345_v2 = vld [vmem:[%s1528_s5 + $0x20] sm:$0xff]  ;;  %v346_v3 = vld [vmem:[%s1528_s5 + $0x28] sm:$0xff]  ;;  %v347_v5 = vld [vmem:[%s1528_s5 + $0x30] sm:$0xff]  ;;  %v338_v23 = vrot.slane %v231_v47, %v1394_v39 }
  0x74   :  { %936 = vmatpush3.bf16.msra.mxu0 %v935_v7  ;;  %v956_v4 = vpack.c.bf16 %v346_v3, %v345_v2  ;;  %v348_v6 = vld [vmem:[%s1528_s5 + $0x38] sm:$0xff]  ;;  %v432_v10 = vld [vmem:[#allocation10 + $0x10] sm:$0xff]  ;;  %v437_v29 = vld [vmem:[#allocation10 + $0x38] sm:$0xff]  ;;  %p1157_p9 = por %p1156_p8, %p1155_p7 }
  0x75   :  { %949 = vmatprep.subr.bf16.mxu0 %v1190_v0  ;;  %v959_v7 = vpack.c.bf16 %v348_v6, %v347_v5  ;;  %v431_v9 = vld [vmem:[#allocation10 + $0x8] sm:$0xff] }
  0x76   :  { %942 = vmatpush3.bf16.msra.mxu1 %v941_v28  ;;  %v436_v28 = vld [vmem:[#allocation10 + $0x30] sm:$0xff]  ;;  %p1158_p10 = pnand %p1157_p9, %p1151_p6 }
  0x77   :  { %842 = vmatmul.mubr.msk.f32.vlgmr.msra.gmra.mrb[0].mxu0 %vm131_vm1, %v121_v8  ;;  %943 = vmatprep.subr.bf16.mxu1 %v1190_v0  ;;  %v430_v8 = vld [vmem:[#allocation10] sm:$0xff]  ;;  %v971_v30 = vpack.c.bf16 %v437_v29, %v436_v28 }
  0x78   :  { %879 = vmatprep.mubr.msk.f32.mxu0 %vm1191_vm0, %v1192_v1  ;;  %951 = vmatpush3.bf16.msra.mxu0 %v950_v60  ;;  %v962_v12 = vpack.c.bf16 %v431_v9, %v430_v8 }
  0x79   :  { %952 = vmatprep.subr.bf16.mxu0 %v1190_v0 }
  0x7a   :  { %945 = vmatpush3.bf16.msra.mxu1 %v944_v31  ;;  %v781_v31 = vld [vmem:[%s1529_s6] ss:$0 sm:$0xff]  ;;  %s1193_s6 = smov 122  }
  0x7b   :  { %946 = vmatprep.subr.bf16.mxu1 %v1190_v0 }
  0x7c   :  { %954 = vmatpush3.bf16.msra.mxu0 %v953_v63 }
  0x7d   :  { %955 = vmatprep.subr.bf16.mxu0 %v1190_v0 }
  0x7e   :  { %948 = vmatpush3.bf16.msra.mxu1 %v947_v34 }
  0x7f   :  { %961 = vmatprep.subr.bf16.mxu1 %v1190_v0 }
  0x80   :  { %957 = vmatpush3.bf16.msra.mxu0 %v956_v4 }
  0x81   :  { %958 = vmatprep.subr.bf16.mxu0 %v1190_v0 }
  0x84   :  { %960 = vmatpush3.bf16.msra.mxu0 %v959_v7  ;;  %v539_v7 = vld [vmem:[%s1533_s10] sm:$0x7] }
  0x85   :  { %973 = vmatprep.subr.bf16.mxu0 %v1190_v0  ;;  %v551_v8 = vrot.slane %v539_v7, %v1359_v11  ;;  %v647_v29 = vrot.slane %v539_v7, %v1394_v39 }
 0x14a   :  { %v201_v14 = vpop.f32.mrb[0].mxu0 }
 0x14b   :  { %v202_v15 = vadd.f32 %v201_v14, %v130_v13  ;;  %v843_v16 = vpop.f32.mrb[1].mxu0  ;;  %v433_v13 = vld [vmem:[#allocation10 + $0x18] sm:$0xff] }
 0x14c   :  { %v965_v14 = vpack.c.bf16 %v433_v13, %v432_v10  ;;  %v435_v16 = vld [vmem:[#allocation10 + $0x28] sm:$0xff] }
 0x14d   :  { %v206_v17 = vsel %vm205_vm2, %v202_v15, 0.0 }
 0x14e   :  { %207 = vadd.xlane.f32.xlu0 %v206_v17 }
 0x1db   :  { %v208_v18 = vpop.xlane.xlu0 %207 }
 0x1dc   :  { %v210_v19 = vmul.f32 0.015625, %v208_v18 }
 0x1de   :  { %v211_v20 = vsub.f32 %v202_v15, %v210_v19  ;;  %v434_v15 = vld [vmem:[#allocation10 + $0x20] sm:$0xff] }
 0x1df   :  { %v968_v17 = vpack.c.bf16 %v435_v16, %v434_v15 }
 0x1e0   :  { %v212_v21 = vmul.f32 %v211_v20, %v211_v20 }
 0x1e2   :  { %v213_v22 = vsel %vm205_vm2, %v212_v21, 0.0  ;;  %v333_v21 = vrot.slane %v231_v47, %v1392_v38 }
 0x1e3   :  { %214 = vadd.xlane.f32.xlu0 %v213_v22 }
 0x270   :  { %v215_v35 = vpop.xlane.xlu0 %214 }
 0x271   :  { %v216_v36 = vmul.f32 0.015625, %v215_v35  ;;  %v429_v35 = vld [vmem:[#allocation11] sm:$0x7] }
 0x272   :  { %v531_v62 = vrot.slane %v429_v35, %v1392_v38  ;;  %v536_v2 = vrot.slane %v429_v35, %v1394_v39 }
 0x273   :  { %v217_v37 = vadd.f32 1e-05, %v216_v36  ;;  %v441_v36 = vrot.slane %v429_v35, %v1359_v11  ;;  %v651_v11 = vld [vmem:[%s1534_s11 + $0x8] sm:$0xff] }
 0x275   :  { %1004 = vrsqrt.f32 %v217_v37 }
 0x27f   :  { %v1005_v41 = vpop.eup %1004 }
 0x280   :  { %v219_v43 = vmul.f32 %v1005_v41, %v211_v20 }
 0x282   :  { %v224_v44 = vmul.f32 %v223_v40, %v219_v43 }
 0x284   :  { %v229_v45 = vadd.f32 %v228_v42, %v224_v44 }
 0x286   :  { %v230_v46 = vmax.f32 %v229_v45, 0.0 }
 0x288   :  { %861 = vmatmul.mubr.msk.f32.vlgmr.msra.gmra.mrb[0].mxu1 %vm205_vm2, %v230_v46 }
 0x289   :  { %898 = vmatprep.mubr.msk.f32.mxu1 %vm1191_vm0, %v1192_v1  ;;  %963 = vmatpush3.bf16.msra.mxu1 %v962_v12 }
 0x28a   :  { %964 = vmatprep.subr.bf16.mxu1 %v1190_v0 }
 0x28d   :  { %966 = vmatpush3.bf16.msra.mxu1 %v965_v14 }
 0x28e   :  { %967 = vmatprep.subr.bf16.mxu1 %v1190_v0 }
 0x291   :  { %969 = vmatpush3.bf16.msra.mxu1 %v968_v17 }
 0x292   :  { %970 = vmatprep.subr.bf16.mxu1 %v1190_v0 }
 0x295   :  { %972 = vmatpush3.bf16.msra.mxu1 %v971_v30 }
 0x296   :  { %985 = vmatprep.subr.bf16.mxu1 %v1190_v0 }
 0x35b   :  { %v313_v49 = vpop.f32.mrb[0].mxu1 }
 0x35c   :  { %v314_v50 = vadd.f32 %v313_v49, %v243_v48  ;;  %v862_v51 = vpop.f32.mrb[1].mxu1  ;;  %v541_v48 = vld [vmem:[%s1532_s9 + $0x8] sm:$0xff] }
 0x35d   :  { %v543_v51 = vld [vmem:[%s1532_s9 + $0x18] sm:$0xff] }
 0x35e   :  { %v317_v52 = vsel %vm205_vm2, %v314_v50, 0.0 }
 0x35f   :  { %318 = vadd.xlane.f32.xlu1 %v317_v52 }
 0x3ec   :  { %v319_v53 = vpop.xlane.xlu1 %318 }
 0x3ed   :  { %v320_v54 = vmul.f32 0.015625, %v319_v53  ;;  %v544_v53 = vld [vmem:[%s1532_s9 + $0x20] sm:$0xff] }
 0x3ef   :  { %v321_v55 = vsub.f32 %v314_v50, %v320_v54  ;;  %v542_v50 = vld [vmem:[%s1532_s9 + $0x10] sm:$0xff]  ;;  %v545_v54 = vld [vmem:[%s1532_s9 + $0x28] sm:$0xff] }
 0x3f0   :  { %v977_v52 = vpack.c.bf16 %v543_v51, %v542_v50 }
 0x3f1   :  { %v322_v56 = vmul.f32 %v321_v55, %v321_v55 }
 0x3f3   :  { %v323_v57 = vsel %vm205_vm2, %v322_v56, 0.0  ;;  %v546_v56 = vld [vmem:[%s1532_s9 + $0x30] sm:$0xff] }
 0x3f4   :  { %324 = vadd.xlane.f32.xlu1 %v323_v57  ;;  %v547_v57 = vld [vmem:[%s1532_s9 + $0x38] sm:$0xff] }
 0x3f5   :  { %v983_v58 = vpack.c.bf16 %v547_v57, %v546_v56 }
 0x481   :  { %v325_v18 = vpop.xlane.xlu1 %324 }
 0x482   :  { %v326_v19 = vmul.f32 0.015625, %v325_v18 }
 0x484   :  { %v327_v20 = vadd.f32 1e-05, %v326_v19  ;;  %v650_v19 = vld [vmem:[%s1534_s11] sm:$0xff] }
 0x486   :  { %1006 = vrsqrt.f32 %v327_v20  ;;  %v986_v20 = vpack.c.bf16 %v651_v11, %v650_v19 }
 0x490   :  { %v1007_v22 = vpop.eup %1006 }
 0x491   :  { %v329_v24 = vmul.f32 %v1007_v22, %v321_v55  ;;  %v980_v55 = vpack.c.bf16 %v545_v54, %v544_v53  ;;  %v653_v22 = vld [vmem:[%s1534_s11 + $0x18] sm:$0xff] }
 0x493   :  { %v334_v25 = vmul.f32 %v333_v21, %v329_v24  ;;  %v652_v21 = vld [vmem:[%s1534_s11 + $0x10] sm:$0xff] }
 0x495   :  { %v339_v26 = vadd.f32 %v338_v23, %v334_v25  ;;  %v989_v23 = vpack.c.bf16 %v653_v22, %v652_v21 }
 0x497   :  { %v340_v27 = vmax.f32 %v339_v26, 0.0 }
 0x499   :  { %880 = vmatmul.mubr.msk.f32.vlgmr.msra.gmra.mrb[2].mxu0 %vm205_vm2, %v340_v27  ;;  %v642_v27 = vrot.slane %v539_v7, %v1392_v38 }
 0x49a   :  { %917 = vmatprep.mubr.msk.f32.mxu0 %vm1191_vm0, %v1192_v1 }
 0x56c   :  { %v425_v32 = vpop.f32.mrb[2].mxu0 }
 0x56d   :  { %v426_v33 = vadd.f32 %v781_v31, %v425_v32  ;;  %v881_v34 = vpop.f32.mrb[3].mxu0 }
 0x56f   :  { %899 = vmatmul.mubr.msk.f32.vlgmr.msra.gmra.mrb[2].mxu1 %vm205_vm2, %v426_v33 }
 0x570   :  { %928 = vmatprep.mubr.msk.f32.mxu1 %vm1191_vm0, %v1192_v1  ;;  %v540_v1 = vld [vmem:[%s1532_s9] sm:$0xff]  ;;  %987 = vmatpush3.bf16.msra.mxu1 %v986_v20 }
 0x571   :  { %v974_v49 = vpack.c.bf16 %v541_v48, %v540_v1  ;;  %988 = vmatprep.subr.bf16.mxu1 %v1190_v0 }
 0x573   :  { %975 = vmatpush3.bf16.msra.mxu0 %v974_v49 }
 0x574   :  { %976 = vmatprep.subr.bf16.mxu0 %v1190_v0  ;;  %990 = vmatpush3.bf16.msra.mxu1 %v989_v23 }
 0x577   :  { %978 = vmatpush3.bf16.msra.mxu0 %v977_v52 }
 0x578   :  { %979 = vmatprep.subr.bf16.mxu0 %v1190_v0 }
 0x57b   :  { %981 = vmatpush3.bf16.msra.mxu0 %v980_v55 }
 0x57c   :  { %982 = vmatprep.subr.bf16.mxu0 %v1190_v0  ;;  %v785_v0 = vld [vmem:[%s1535_s12] ss:$0 sm:$0xff] }
 0x57f   :  { %984 = vmatpush3.bf16.msra.mxu0 %v983_v58 }
 0x642   :  { %v511_v37 = vpop.f32.mrb[2].mxu1 }
 0x643   :  { %v512_v40 = vadd.f32 %v511_v37, %v441_v36  ;;  %v900_v41 = vpop.f32.mrb[3].mxu1 }
 0x645   :  { %v515_v42 = vsel %vm205_vm2, %v512_v40, 0.0 }
 0x646   :  { %516 = vadd.xlane.f32.xlu0 %v515_v42 }
 0x6d3   :  { %v517_v43 = vpop.xlane.xlu0 %516 }
 0x6d4   :  { %v518_v44 = vmul.f32 0.015625, %v517_v43 }
 0x6d6   :  { %v519_v45 = vsub.f32 %v512_v40, %v518_v44 }
 0x6d8   :  { %v520_v46 = vmul.f32 %v519_v45, %v519_v45 }
 0x6da   :  { %v521_v47 = vsel %vm205_vm2, %v520_v46, 0.0 }
 0x6db   :  { %522 = vadd.xlane.f32.xlu1 %v521_v47 }
 0x768   :  { %v523_v59 = vpop.xlane.xlu1 %522 }
 0x769   :  { %v524_v60 = vmul.f32 0.015625, %v523_v59 }
 0x76b   :  { %v525_v61 = vadd.f32 1e-05, %v524_v60 }
 0x76d   :  { %1008 = vrsqrt.f32 %v525_v61 }
 0x777   :  { %v1009_v63 = vpop.eup %1008 }
 0x778   :  { %v527_v3 = vmul.f32 %v1009_v63, %v519_v45 }
 0x77a   :  { %v532_v4 = vmul.f32 %v531_v62, %v527_v3 }
 0x77c   :  { %v537_v5 = vadd.f32 %v536_v2, %v532_v4 }
 0x77e   :  { %v538_v6 = vmax.f32 %v537_v5, 0.0 }
 0x780   :  { %918 = vmatmul.mubr.msk.f32.vlgmr.msra.gmra.mrb[4].mxu0 %vm205_vm2, %v538_v6 }
 0x853   :  { %v621_v9 = vpop.f32.mrb[4].mxu0 }
 0x854   :  { %v622_v10 = vadd.f32 %v621_v9, %v551_v8  ;;  %v919_v12 = vpop.f32.mrb[5].mxu0 }
 0x856   :  { %v625_v13 = vsel %vm131_vm1, %v622_v10, 0.0 }
 0x857   :  { %626 = vadd.xlane.f32.xlu0 %v625_v13 }
 0x8e4   :  { %v627_v14 = vpop.xlane.xlu0 %626 }
 0x8e5   :  { %v629_v15 = vmul.f32 0.03125, %v627_v14 }
 0x8e7   :  { %v630_v16 = vsub.f32 %v622_v10, %v629_v15 }
 0x8e9   :  { %v631_v17 = vmul.f32 %v630_v16, %v630_v16 }
 0x8eb   :  { %v632_v18 = vsel %vm131_vm1, %v631_v17, 0.0 }
 0x8ec   :  { %633 = vadd.xlane.f32.xlu1 %v632_v18 }
 0x979   :  { %v634_v24 = vpop.xlane.xlu1 %633 }
 0x97a   :  { %v635_v25 = vmul.f32 0.03125, %v634_v24 }
 0x97c   :  { %v636_v26 = vadd.f32 1e-05, %v635_v25 }
 0x97e   :  { %1010 = vrsqrt.f32 %v636_v26 }
 0x988   :  { %v1011_v28 = vpop.eup %1010 }
 0x989   :  { %v638_v30 = vmul.f32 %v1011_v28, %v630_v16 }
 0x98b   :  { %v643_v31 = vmul.f32 %v642_v27, %v638_v30 }
 0x98d   :  { %v648_v32 = vadd.f32 %v647_v29, %v643_v31 }
 0x98f   :  { %v649_v33 = vmax.f32 %v648_v32, 0.0 }
 0x991   :  { %929 = vmatmul.mubr.msk.f32.vlgmr.msra.gmra.mrb[4].mxu1 %vm131_vm1, %v649_v33 }
 0xa64   :  { %v730_v34 = vpop.f32.mrb[4].mxu1 }
 0xa65   :  { %v731_v35 = vadd.f32 %v785_v0, %v730_v34  ;;  %v930_v36 = vpop.f32.mrb[5].mxu1 }
 0xa67   :  { %v747_v37 = vmul.f32 0.5, %v731_v35  ;;  %v735_v38 = vsel %vm734_vm3, %v731_v35, -inf }
 0xa68   :  { %736 = vmax.xlane.f32.xlu0 %v735_v38 }
 0xa69   :  { %1012 = vtanh.f32 %v747_v37 }
 0xa73   :  { %v1013_v39 = vpop.eup %1012 }
 0xa74   :  { %v749_v40 = vmul.f32 0.5, %v1013_v39 }
 0xa76   :  { %v750_v41 = vadd.f32 0.5, %v749_v40 }
 0xa7e   :  { %752 = vrot.lane.b32.xlu0 %v750_v41, %s1193_s6 }
 0xaf5   :  { %v737_v42 = vpop.xlane.xlu0 %736 }
 0xaf6   :  { %v738_v43 = vsub.f32 %v731_v35, %v737_v42 }
 0xaf8   :  { %v739_v44 = vmul.f32 1.442695, %v738_v43 }
 0xaf9   :  { %v753_v45 = vpop.permute.xlu0 %752 }
 0xafa   :  { %1014 = vpow2.f32 %v739_v44  ;;  %756 = vst.msk [vmem:[%s1537_s14] sm:$0xff] %vm755_vm4, %v753_v45 }
 0xb04   :  { %v1015_v46 = vpop.eup %1014 }
 0xb05   :  { %v741_v47 = vsel %vm734_vm3, %v1015_v46, 0.0 }
 0xb06   :  { %742 = vadd.xlane.f32.xlu1 %v741_v47 }
 0xb93   :  { %v743_v1 = vpop.xlane.xlu1 %742 }
 0xb94   :  { %1016 = vrcp.f32 %v743_v1 }
 0xb9e   :  { %v1017_v48 = vpop.eup %1016 }
 0xb9f   :  { %v745_v49 = vmul.f32 %v1017_v48, %v1015_v46 }
 0xba1   :  { %746 = vst.msk [vmem:[#allocation13] sm:$0xff] %vm734_vm3, %v745_v49 }
 0xba2   :  { %1161 = shalt.err (!%p1158_p10)
}
 0xba3   :  { %s1162_s15 = scalar_lea.hbm %s1536_s13, 128 }
 0xba4   :  { %p1163_p11 = scmp.ne.s32.totalorder %s1536_s13, %s1162_s15  ;;  %p1166_p12 = scmp.lt.u32.totalorder %s1162_s15, %s1536_s13 }
 0xba6   :  { %p1168_p13 = pnand %p1166_p12, %p1163_p11 }
 0xba8   :  { %1171 = shalt.err (!%p1168_p13)
}
 0xba9   :  { %766 = dma.vmem_to_hbm [thread:$0]  %s764_s17, 128, %s1536_s13, [#allocation4]  }
 0xbaa   :  { %1180 = dma.done.wait [#allocation4], 128  }
 0xbab   :  { %1181 = vsyncadd [#allocation4], 4294967168 }
 0xbac   :  { %774 = vsyncpa [#allocation3], 1 }
 0xbad   :  { %775 = vsyncpa [#allocation6], 1 }
 0xbae   :  { %776 = vsyncpa [#allocation9], 1 }
 0xbaf   :  { %777 = vsyncpa [#allocation12], 1 }
 0xbb0   :  { %778 = vsyncpa [#allocation4], 1 }

</bundles_post_ra>
